<compile_context>
chip_gen: v7x
topology: tpu7x:2x2x1
jax: 0.10.0
libtpu: 0.0.40
codegen_flags: <defaults>
</compile_context>

<pallas_src>
import functools

import jax
import jax.numpy as jnp
from jax.experimental import pallas as pl
from jax.experimental.pallas import tpu as pltpu

EPS = 1e-5

# Tiling constants (sized to fit comfortably in scoped VMEM on v5e/v6e/v7x).
DEFAULT_TILE_M = 256      # output-row tile (multiple of 8)
LANE = 128                # lane tile granularity for the output channel dim
MAX_K_TILE = 512          # reduction tile when K is large


def _round_up(x, m):
    return (x + m - 1) // m * m


# ---------------------------------------------------------------------------
# Pallas kernels: tiled matmul + folded-BN bias (+ residual) (+ ReLU)
#   grid = (n_cout, n_m, n_k)   k innermost ("arbitrary" reduction axis)
# ---------------------------------------------------------------------------
def _conv_bn_kernel(x_ref, w_ref, b_ref, o_ref, acc_ref, *, relu):
    @pl.when(pl.program_id(2) == 0)
    def _():
        acc_ref[...] = jnp.zeros_like(acc_ref)

    acc_ref[...] += jnp.dot(x_ref[...], w_ref[...],
                            preferred_element_type=jnp.float32)

    @pl.when(pl.program_id(2) == pl.num_programs(2) - 1)
    def _():
        y = acc_ref[...] + b_ref[...]
        if relu:
            y = jnp.maximum(y, 0.0)
        o_ref[...] = y.astype(o_ref.dtype)


def _conv_bn_add_relu_kernel(x_ref, w_ref, b_ref, sc_ref, o_ref, acc_ref):
    @pl.when(pl.program_id(2) == 0)
    def _():
        acc_ref[...] = jnp.zeros_like(acc_ref)

    acc_ref[...] += jnp.dot(x_ref[...], w_ref[...],
                            preferred_element_type=jnp.float32)

    @pl.when(pl.program_id(2) == pl.num_programs(2) - 1)
    def _():
        y = acc_ref[...] + b_ref[...] + sc_ref[...]
        o_ref[...] = jnp.maximum(y, 0.0).astype(o_ref.dtype)


def _tiled_matmul_bn(patches, w_scaled, bias, shortcut=None, *, relu=True):
    """act((patches @ w_scaled) + bias [+ shortcut]); returns (M, Cout) f32."""
    M, K = patches.shape
    Cout = w_scaled.shape[1]

    # Lane-dense output tiling: pad Cout to a multiple of 128.
    n_pad = _round_up(Cout, LANE)
    tile_n = 256 if n_pad % 256 == 0 else LANE

    # M tiling (rows of the im2col / output matrix).
    m8 = _round_up(M, 8)
    tile_m = min(DEFAULT_TILE_M, m8)
    m_pad = _round_up(m8, tile_m)

    # K tiling (reduction axis).
    if K <= MAX_K_TILE:
        tile_k, k_pad = K, K           # one full-K block, no K padding
    else:
        tile_k = MAX_K_TILE
        k_pad = _round_up(K, tile_k)

    grid = (n_pad // tile_n, m_pad // tile_m, k_pad // tile_k)

    # bf16 MXU operands (f32 accumulation in-kernel); epilogue stays f32.
    x_p = jnp.pad(patches, ((0, m_pad - M), (0, k_pad - K))).astype(jnp.bfloat16)
    w_p = jnp.pad(w_scaled, ((0, k_pad - K), (0, n_pad - Cout))).astype(jnp.bfloat16)
    b_p = jnp.pad(bias, (0, n_pad - Cout)).reshape(1, n_pad).astype(jnp.float32)

    in_specs = [
        pl.BlockSpec((tile_m, tile_k), lambda j, i, k: (i, k)),       # activations
        pl.BlockSpec((tile_k, tile_n), lambda j, i, k: (k, j)),       # weights: no M dep
        pl.BlockSpec((1, tile_n), lambda j, i, k: (0, j)),            # folded BN bias
    ]
    operands = [x_p, w_p, b_p]

    if shortcut is None:
        kernel = functools.partial(_conv_bn_kernel, relu=relu)
    else:
        sc_p = jnp.pad(shortcut,
                       ((0, m_pad - M), (0, n_pad - Cout))).astype(jnp.float32)
        in_specs.append(pl.BlockSpec((tile_m, tile_n), lambda j, i, k: (i, j)))
        operands.append(sc_p)
        kernel = _conv_bn_add_relu_kernel

    out = pl.pallas_call(
        kernel,
        out_shape=jax.ShapeDtypeStruct((m_pad, n_pad), jnp.float32),
        grid=grid,
        in_specs=in_specs,
        out_specs=pl.BlockSpec((tile_m, tile_n), lambda j, i, k: (i, j)),
        scratch_shapes=[pltpu.VMEM((tile_m, tile_n), jnp.float32)],
        compiler_params=pltpu.CompilerParams(
            dimension_semantics=("parallel", "parallel", "arbitrary"),
            vmem_limit_bytes=32 * 1024 * 1024),
    )(*operands)
    return out[:M, :Cout]


# ---------------------------------------------------------------------------
# Glue: im2col, BN folding, weight layout
# ---------------------------------------------------------------------------
def im2col_3x3(x_nhwc, stride):
    """3x3 conv, padding=1.  Returns (N*Ho*Wo, 9*C), Ho, Wo."""
    N, H, W, C = x_nhwc.shape
    xp = jnp.pad(x_nhwc, ((0, 0), (1, 1), (1, 1), (0, 0)))
    Ho = (H + 2 - 3) // stride + 1
    Wo = (W + 2 - 3) // stride + 1
    cols = []
    for kh in range(3):
        for kw in range(3):
            patch = xp[:, kh:kh + stride * (Ho - 1) + 1:stride,
                       kw:kw + stride * (Wo - 1) + 1:stride, :]
            cols.append(patch)
    patches = jnp.concatenate(cols, axis=-1)  # (N, Ho, Wo, 9*C)
    return patches.reshape(N * Ho * Wo, 9 * C), Ho, Wo


def fold_bn(bn_params):
    gamma, beta, mean, var = bn_params
    scale = gamma / jnp.sqrt(var + EPS)
    bias = beta - mean * scale
    return scale, bias


def w3x3_to_mat(w_oihw):
    # W_mat[(kh*3+kw)*Cin + c, cout] = w[cout, c, kh, kw]
    Cout, Cin = w_oihw.shape[0], w_oihw.shape[1]
    return jnp.transpose(w_oihw, (2, 3, 1, 0)).reshape(9 * Cin, Cout)


def w1x1_to_mat(w_oihw):
    Cout, Cin = w_oihw.shape[0], w_oihw.shape[1]
    return jnp.transpose(w_oihw, (2, 3, 1, 0)).reshape(Cin, Cout)


def basic_block_forward(x_nchw, params, stride):
    x = jnp.transpose(x_nchw, (0, 2, 3, 1)).astype(jnp.float32)  # NCHW -> NHWC
    N, H, W, Cin = x.shape
    planes = params["w1"].shape[0]

    # conv1 (3x3, stride) + bn1 + relu
    p1, Ho, Wo = im2col_3x3(x, stride)
    s1, b1 = fold_bn(params["bn1"])
    w1 = w3x3_to_mat(params["w1"]) * s1[None, :]          # fold BN scale
    out1 = _tiled_matmul_bn(p1, w1, b1, relu=True)        # (M, planes)
    out1_nhwc = out1.reshape(N, Ho, Wo, planes)

    # shortcut (rows ordered (n, ho, wo) to match the output tiles)
    if stride != 1 or Cin != planes:
        xs = x[:, ::stride, ::stride, :].reshape(N * Ho * Wo, Cin)
        ss, bs = fold_bn(params["bns"])
        ws = w1x1_to_mat(params["ws"]) * ss[None, :]
        sc = _tiled_matmul_bn(xs, ws, bs, relu=False)
    else:
        sc = x.reshape(N * H * W, Cin)

    # conv2 (3x3, stride=1) + bn2 + residual add + relu (fused kernel)
    p2, _, _ = im2col_3x3(out1_nhwc, 1)
    s2, b2 = fold_bn(params["bn2"])
    w2 = w3x3_to_mat(params["w2"]) * s2[None, :]
    out = _tiled_matmul_bn(p2, w2, b2, shortcut=sc, relu=True)

    out = out.reshape(N, Ho, Wo, planes)
    return jnp.transpose(out, (0, 3, 1, 2))  # back to NCHW


# ---------------------------------------------------------------------------
# Pure-JAX f32 reference (ground truth for the correctness check)
# ---------------------------------------------------------------------------
def _ref_bn(x, p):
    g, b, m, v = p
    inv = g / jnp.sqrt(v + EPS)
    return (x - m[None, :, None, None]) * inv[None, :, None, None] + b[None, :, None, None]


def _ref_conv(x, w, stride, pad):
    return jax.lax.conv_general_dilated(
        x, w, (stride, stride), [(pad, pad), (pad, pad)],
        dimension_numbers=("NCHW", "OIHW", "NCHW"),
        precision=jax.lax.Precision.HIGHEST)


def ref_forward(x, params, stride):
    out = jax.nn.relu(_ref_bn(_ref_conv(x, params["w1"], stride, 1), params["bn1"]))
    out = _ref_bn(_ref_conv(out, params["w2"], 1, 1), params["bn2"])
    if stride != 1 or x.shape[1] != params["w1"].shape[0]:
        sc = _ref_bn(_ref_conv(x, params["ws"], stride, 0), params["bns"])
    else:
        sc = x
    return jax.nn.relu(out + sc)


# ---------------------------------------------------------------------------
# Deterministic parameter init (shapes per BasicBlock.__init__)
# ---------------------------------------------------------------------------
def init_params(key, in_planes, planes, stride):
    ks = jax.random.split(key, 10)

    def bn_init(k):
        k1, k2, k3, k4 = jax.random.split(k, 4)
        gamma = jax.random.uniform(k1, (planes,), minval=0.5, maxval=1.5)
        beta = jax.random.normal(k2, (planes,)) * 0.1
        mean = jax.random.normal(k3, (planes,)) * 0.1
        var = jax.random.uniform(k4, (planes,), minval=0.5, maxval=1.5)
        return (gamma, beta, mean, var)

    params = {
        "w1": jax.random.normal(ks[0], (planes, in_planes, 3, 3)) * 0.1,
        "bn1": bn_init(ks[1]),
        "w2": jax.random.normal(ks[2], (planes, planes, 3, 3)) * 0.1,
        "bn2": bn_init(ks[3]),
    }
    if stride != 1 or in_planes != planes:
        params["ws"] = jax.random.normal(ks[4], (planes, in_planes, 1, 1)) * 0.1
        params["bns"] = bn_init(ks[5])
    return jax.tree.map(lambda a: a.astype(jnp.float32), params)


# ---------------------------------------------------------------------------
if __name__ == "__main__":
    key = jax.random.PRNGKey(0)
    kx, kp1, kp2 = jax.random.split(key, 3)

    # Tolerance accounts for bf16 MXU inputs (f32 accumulation) vs f32 reference.
    TOL = 2e-2

    # Case 1: projection shortcut (stride=2, channel change)  x: (2, 4, 16, 16) NCHW
    x = jax.random.normal(kx, (2, 4, 16, 16), dtype=jnp.float32)
    params = init_params(kp1, in_planes=4, planes=8, stride=2)
    out = basic_block_forward(x, params, stride=2)
    out = jax.block_until_ready(out)
    ref = ref_forward(x, params, 2)
    assert out.shape == ref.shape == (2, 8, 8, 8)
    assert jnp.allclose(out, ref, rtol=TOL, atol=TOL), "projection block mismatch"

    # Case 2: identity shortcut (stride=1, in_planes == planes)
    x2 = jax.random.normal(kx, (2, 8, 16, 16), dtype=jnp.float32)
    params2 = init_params(kp2, in_planes=8, planes=8, stride=1)
    out2 = basic_block_forward(x2, params2, stride=1)
    out2 = jax.block_until_ready(out2)
    ref2 = ref_forward(x2, params2, 1)
    assert out2.shape == ref2.shape == (2, 8, 16, 16)
    assert jnp.allclose(out2, ref2, rtol=TOL, atol=TOL), "identity block mismatch"

    print("KERNEL_OK")
</pallas_src>

<mosaic_0001>
module attributes {stable_mosaic.version = 11 : i64} {
  func.func @_conv_bn_kernel(%arg0: i32, %arg1: i32, %arg2: i32, %arg3: memref<128x36xbf16, #tpu.memory_space<vmem>>, %arg4: memref<36x128xbf16, #tpu.memory_space<vmem>>, %arg5: memref<1x128xf32, #tpu.memory_space<vmem>>, %arg6: memref<128x128xf32, #tpu.memory_space<vmem>>, %arg7: memref<128x128xf32, #tpu.memory_space<vmem>>) attributes {dimension_semantics = [#tpu.dimension_semantics<parallel>, #tpu.dimension_semantics<parallel>, #tpu.dimension_semantics<arbitrary>], iteration_bounds = array<i64: 1, 1, 1>, scalar_prefetch = 0 : i64, scratch_operands = 1 : i64, tpu.core_type = #tpu.core_type<tc>, window_params = [{transform_indices = @transform_0, window_bounds = array<i64: 128, 36>}, {transform_indices = @transform_1, window_bounds = array<i64: 36, 128>}, {transform_indices = @transform_2, window_bounds = array<i64: 1, 128>}, {transform_indices = @transform_3, window_bounds = array<i64: 128, 128>}]} {
    %c0_i32 = arith.constant 0 : i32
    %0 = arith.cmpi eq, %arg2, %c0_i32 : i32
    %1 = arith.extui %0 : i1 to i32
    %c0_i32_0 = arith.constant 0 : i32
    %2 = arith.cmpi ne, %1, %c0_i32_0 : i32
    scf.if %2 {
      %cst_10 = arith.constant 0.000000e+00 : f32
      %12 = vector.broadcast %cst_10 : f32 to vector<128x128xf32>
      %c0_11 = arith.constant 0 : index
      %c0_12 = arith.constant 0 : index
      %13 = vector.load %arg7[%c0_11, %c0_12] : memref<128x128xf32, #tpu.memory_space<vmem>>, vector<128x128xf32>
      tpu.vector_store %arg7[%c0_11, %c0_12], %12 {strides = array<i32>} : memref<128x128xf32, #tpu.memory_space<vmem>>, vector<128x128xf32>,
    } else {
    }
    %c0 = arith.constant 0 : index
    %c0_1 = arith.constant 0 : index
    %3 = vector.load %arg7[%c0, %c0_1] : memref<128x128xf32, #tpu.memory_space<vmem>>, vector<128x128xf32>
    %c0_2 = arith.constant 0 : index
    %c0_3 = arith.constant 0 : index
    %4 = vector.load %arg3[%c0_2, %c0_3] : memref<128x36xbf16, #tpu.memory_space<vmem>>, vector<128x36xbf16>
    %c0_4 = arith.constant 0 : index
    %c0_5 = arith.constant 0 : index
    %5 = vector.load %arg4[%c0_4, %c0_5] : memref<36x128xbf16, #tpu.memory_space<vmem>>, vector<36x128xbf16>
    %cst = arith.constant dense<0.000000e+00> : vector<128x128xf32>
    %6 = tpu.matmul %4, %5, %cst {dimension_numbers = #tpu.dot_dimension_numbers<[1], [0], [0], [1], [0, 0, 1, 1], [], []>} : vector<128x36xbf16>, vector<36x128xbf16>, vector<128x128xf32> -> vector<128x128xf32>
    %7 = arith.addf %3, %6 : vector<128x128xf32>
    %c0_6 = arith.constant 0 : index
    %c0_7 = arith.constant 0 : index
    %8 = vector.load %arg7[%c0_6, %c0_7] : memref<128x128xf32, #tpu.memory_space<vmem>>, vector<128x128xf32>
    tpu.vector_store %arg7[%c0_6, %c0_7], %7 {strides = array<i32>} : memref<128x128xf32, #tpu.memory_space<vmem>>, vector<128x128xf32>,
    %c0_i32_8 = arith.constant 0 : i32
    %9 = arith.cmpi eq, %arg2, %c0_i32_8 : i32
    %10 = arith.extui %9 : i1 to i32
    %c0_i32_9 = arith.constant 0 : i32
    %11 = arith.cmpi ne, %10, %c0_i32_9 : i32
    scf.if %11 {
      %c0_10 = arith.constant 0 : index
      %c0_11 = arith.constant 0 : index
      %12 = vector.load %arg7[%c0_10, %c0_11] : memref<128x128xf32, #tpu.memory_space<vmem>>, vector<128x128xf32>
      %c0_12 = arith.constant 0 : index
      %c0_13 = arith.constant 0 : index
      %13 = vector.load %arg5[%c0_12, %c0_13] : memref<1x128xf32, #tpu.memory_space<vmem>>, vector<1x128xf32>
      %14 = vector.broadcast %13 : vector<1x128xf32> to vector<128x128xf32>
      %15 = arith.addf %12, %14 : vector<128x128xf32>
      %cst_14 = arith.constant 0.000000e+00 : f32
      %16 = vector.broadcast %cst_14 : f32 to vector<128x128xf32>
      %17 = arith.maximumf %15, %16 : vector<128x128xf32>
      %c0_15 = arith.constant 0 : index
      %c0_16 = arith.constant 0 : index
      %18 = vector.load %arg6[%c0_15, %c0_16] : memref<128x128xf32, #tpu.memory_space<vmem>>, vector<128x128xf32>
      tpu.vector_store %arg6[%c0_15, %c0_16], %17 {strides = array<i32>} : memref<128x128xf32, #tpu.memory_space<vmem>>, vector<128x128xf32>,
    } else {
    }
    return
  }
  func.func @transform_0(%arg0: i32, %arg1: i32, %arg2: i32) -> (i32, i32) {
    %c0_i32 = arith.constant 0 : i32
    return %arg1, %arg2 : i32, i32
  }
  func.func @transform_1(%arg0: i32, %arg1: i32, %arg2: i32) -> (i32, i32) {
    %c0_i32 = arith.constant 0 : i32
    return %arg2, %arg0 : i32, i32
  }
  func.func @transform_2(%arg0: i32, %arg1: i32, %arg2: i32) -> (i32, i32) {
    %c0_i32 = arith.constant 0 : i32
    %c0_i32_0 = arith.constant 0 : i32
    return %c0_i32, %arg0 : i32, i32
  }
  func.func @transform_3(%arg0: i32, %arg1: i32, %arg2: i32) -> (i32, i32) {
    %c0_i32 = arith.constant 0 : i32
    return %arg1, %arg0 : i32, i32
  }
}

</mosaic_0001>

<bundles_post_ra>
// kernel: tpu_custom_call.1
= control target key start
LH: loop header
LB: loop body
LE: loop exit
PB: predicated region body
PF: predicated region fallthrough
CT: control target
= control target key end

     0   :  { %vm128_vm0 = vcmask 293888   ;;  %vm153_vm1 = vcmask 1041408   ;;  %s554_s0 = inlined_call_operand.vmem [shape: bf16[128,36], index: 0, kind: input, shape index: {}]   ;;  %s555_s1 = inlined_call_operand.vmem [shape: bf16[36,128], index: 1, kind: input, shape index: {}]   ;;  %s556_s2 = inlined_call_operand.vmem [shape: f32[1,128], index: 2, kind: input, shape index: {}]   ;;  %s557_s3 = inlined_call_operand.hbm [shape: f32[128,128], index: 3, kind: output, shape index: {}]  }
   0x1   :  { %v440_v0 = vld [vmem:[%s555_s1] sm:$0xff]   ;;  %v441_v1 = vld [vmem:[%s555_s1 + $0x8] sm:$0xff]   ;;  %v442_v2 = vld [vmem:[%s555_s1 + $0x10] ss:$0 sps:$4 sm:$0x33]  }
   0x2   :  { %407 = vmatprep.subr.bf16.mxu0 %v440_v0  ;;  %429 = vmatprep.subr.bf16.mxu1 %v440_v0  ;;  %v443_v3 = vld [vmem:[%s554_s0] sm:$0xff]   ;;  %v155_v5 = vsel %vm153_vm1, %v442_v2, 0  ;;  %v445_v6 = vld [vmem:[%s554_s0 + $0x8] sm:$0xff]  }
   0x3   :  { %408 = vmatpush3.bf16.msra.mxu0 %v440_v0  ;;  %432 = vmatpush3.bf16.msra.mxu1 %v440_v0  ;;  %v444_v4 = vld [vmem:[%s554_s0 + $0x20] sm:$0xff]   ;;  %v446_v7 = vld [vmem:[%s554_s0 + $0x28] sm:$0xff]  }
   0x4   :  { %409 = vmatprep.subr.bf16.mxu0 %v441_v1  ;;  %430 = vmatprep.subr.bf16.mxu1 %v441_v1 }
   0x5   :  { %413 = vmatprep.mubr.msk.bf16.mxu0 %vm128_vm0, %v443_v3  ;;  %421 = vmatprep.mubr.msk.bf16.mxu1 %vm128_vm0, %v444_v4 }
   0x7   :  { %410 = vmatpush3.bf16.msra.mxu0 %v441_v1  ;;  %433 = vmatpush3.bf16.msra.mxu1 %v441_v1 }
   0x8   :  { %435 = vmatprep.subr.msk.bf16.mxu0 %vm153_vm1, %v442_v2  ;;  %436 = vmatprep.subr.msk.bf16.mxu1 %vm153_vm1, %v442_v2 }
   0x9   :  { %8 = vsyncpa [#allocation4], 0  ;;  %v447_v8 = vld [vmem:[%s554_s0 + $0x10] sm:$0xff]   ;;  %v449_v10 = vld [vmem:[%s554_s0 + $0x18] sm:$0xff]  }
   0xa   :  { %v448_v9 = vld [vmem:[%s554_s0 + $0x30] sm:$0xff]   ;;  %v450_v11 = vld [vmem:[%s554_s0 + $0x38] sm:$0xff]   ;;  %v395_v12 = vld [vmem:[%s556_s2] ss:$0 sm:$0xff]  ;;  %s475_s0 = smov [#allocation3]  }
   0xb   :  { %412 = vmatpush3.bf16.msra.mxu0 %v155_v5  ;;  %434 = vmatpush3.bf16.msra.mxu1 %v155_v5  ;;  %s365_s2 = sshll.u32 %s475_s0, 4  ;;  %s366_s2 = int_to_ptr.vmem [resolvable:$true] %s365_s2 }
   0xc   :  { %s451_s8 = scalar_lea.vmem %s366_s2, 2048  ;;  %p456_p1 = scmp.lt.s32.totalorder %s366_s2, %s366_s2 }
   0xd   :  { %p452_p0 = scmp.ne.s32.totalorder %s366_s2, %s451_s8  ;;  %p457_p2 = scmp.lt.s32.totalorder %s451_s8, %s451_s8 }
   0xe   :  { %414 = vmatmul.mubr.msk.bf16.vlgmr.msra.gmra.mrb[0].mxu0 %vm128_vm0, %v445_v6  ;;  %422 = vmatmul.mubr.msk.bf16.vlgmr.msra.gmra.mrb[0].mxu1 %vm128_vm0, %v446_v7 }
   0xf   :  { %417 = vmatprep.mubr.msk.bf16.mxu0 %vm128_vm0, %v447_v8  ;;  %425 = vmatprep.mubr.msk.bf16.mxu1 %vm128_vm0, %v448_v9  ;;  %p458_p3 = por %p457_p2, %p456_p1 }
  0x11   :  { %p459_p4 = pnand %p458_p3, %p452_p0 }
  0x16   :  { %418 = vmatmul.mubr.msk.bf16.gmra.mrb[4].mxu0 %vm128_vm0, %v449_v10  ;;  %426 = vmatmul.mubr.msk.bf16.gmra.mrb[4].mxu1 %vm128_vm0, %v450_v11 }
  0xe1   :  { %v415_v13 = vpop.f32.mrb[0].mxu0  ;;  %v423_v14 = vpop.f32.mrb[0].mxu1 }
  0xe2   :  { %v314_v15 = vadd.f32 %v415_v13, %v395_v12  ;;  %v322_v16 = vadd.f32 %v423_v14, %v395_v12  ;;  %v191_v17 = vpop.f32.mrb[1].mxu0  ;;  %v223_v18 = vpop.f32.mrb[1].mxu1 }
  0xe3   :  { %v312_v19 = vadd.f32 %v395_v12, %v191_v17  ;;  %v320_v20 = vadd.f32 %v395_v12, %v223_v18  ;;  %v416_v21 = vpop.f32.mrb[2].mxu0  ;;  %v424_v22 = vpop.f32.mrb[2].mxu1 }
  0xe4   :  { %v330_v23 = vmax.f32 %v314_v15, 0.0  ;;  %v338_v24 = vmax.f32 %v322_v16, 0.0  ;;  %v315_v25 = vadd.f32 %v416_v21, %v395_v12  ;;  %v323_v26 = vadd.f32 %v424_v22, %v395_v12  ;;  %v194_v27 = vpop.f32.mrb[3].mxu0  ;;  %v226_v28 = vpop.f32.mrb[3].mxu1 }
  0xe5   :  { %v328_v29 = vmax.f32 %v312_v19, 0.0  ;;  %v336_v30 = vmax.f32 %v320_v20, 0.0  ;;  %v313_v31 = vadd.f32 %v395_v12, %v194_v27  ;;  %v321_v32 = vadd.f32 %v395_v12, %v226_v28 }
  0xe6   :  { %346 = vst [vmem:[#allocation3 + $0x10] sm:$0xff] %v330_v23  ;;  %354 = vst [vmem:[#allocation3 + $0x50] sm:$0xff] %v338_v24  ;;  %v331_v33 = vmax.f32 %v315_v25, 0.0  ;;  %v339_v34 = vmax.f32 %v323_v26, 0.0 }
  0xe7   :  { %344 = vst [vmem:[#allocation3] sm:$0xff] %v328_v29  ;;  %352 = vst [vmem:[#allocation3 + $0x40] sm:$0xff] %v336_v30  ;;  %v329_v35 = vmax.f32 %v313_v31, 0.0  ;;  %v337_v36 = vmax.f32 %v321_v32, 0.0 }
  0xe8   :  { %347 = vst [vmem:[#allocation3 + $0x18] sm:$0xff] %v331_v33  ;;  %355 = vst [vmem:[#allocation3 + $0x58] sm:$0xff] %v339_v34 }
  0xe9   :  { %345 = vst [vmem:[#allocation3 + $0x8] sm:$0xff] %v329_v35  ;;  %353 = vst [vmem:[#allocation3 + $0x48] sm:$0xff] %v337_v36  ;;  %v419_v37 = vpop.f32.mrb[4].mxu0  ;;  %v427_v38 = vpop.f32.mrb[4].mxu1 }
  0xea   :  { %v318_v39 = vadd.f32 %v419_v37, %v395_v12  ;;  %v326_v40 = vadd.f32 %v427_v38, %v395_v12  ;;  %v207_v41 = vpop.f32.mrb[5].mxu0  ;;  %v239_v42 = vpop.f32.mrb[5].mxu1 }
  0xeb   :  { %v316_v43 = vadd.f32 %v395_v12, %v207_v41  ;;  %v324_v44 = vadd.f32 %v395_v12, %v239_v42  ;;  %v420_v45 = vpop.f32.mrb[6].mxu0  ;;  %v428_v46 = vpop.f32.mrb[6].mxu1 }
  0xec   :  { %v334_v47 = vmax.f32 %v318_v39, 0.0  ;;  %v342_v48 = vmax.f32 %v326_v40, 0.0  ;;  %v319_v49 = vadd.f32 %v420_v45, %v395_v12  ;;  %v327_v50 = vadd.f32 %v428_v46, %v395_v12  ;;  %v210_v51 = vpop.f32.mrb[7].mxu0  ;;  %v242_v52 = vpop.f32.mrb[7].mxu1 }
  0xed   :  { %v332_v53 = vmax.f32 %v316_v43, 0.0  ;;  %v340_v54 = vmax.f32 %v324_v44, 0.0  ;;  %v317_v55 = vadd.f32 %v395_v12, %v210_v51  ;;  %v325_v56 = vadd.f32 %v395_v12, %v242_v52 }
  0xee   :  { %350 = vst [vmem:[#allocation3 + $0x30] sm:$0xff] %v334_v47  ;;  %358 = vst [vmem:[#allocation3 + $0x70] sm:$0xff] %v342_v48  ;;  %v335_v57 = vmax.f32 %v319_v49, 0.0  ;;  %v343_v58 = vmax.f32 %v327_v50, 0.0 }
  0xef   :  { %348 = vst [vmem:[#allocation3 + $0x20] sm:$0xff] %v332_v53  ;;  %356 = vst [vmem:[#allocation3 + $0x60] sm:$0xff] %v340_v54  ;;  %v333_v59 = vmax.f32 %v317_v55, 0.0  ;;  %v341_v60 = vmax.f32 %v325_v56, 0.0 }
  0xf0   :  { %351 = vst [vmem:[#allocation3 + $0x38] sm:$0xff] %v335_v57  ;;  %359 = vst [vmem:[#allocation3 + $0x78] sm:$0xff] %v343_v58 }
  0xf1   :  { %349 = vst [vmem:[#allocation3 + $0x28] sm:$0xff] %v333_v59  ;;  %357 = vst [vmem:[#allocation3 + $0x68] sm:$0xff] %v341_v60 }
  0xf2   :  { %462 = shalt.err (!%p459_p4)
}
  0xf3   :  { %s463_s11 = scalar_lea.hbm %s557_s3, 2048 }
  0xf4   :  { %p464_p5 = scmp.ne.s32.totalorder %s557_s3, %s463_s11  ;;  %p467_p6 = scmp.lt.u32.totalorder %s463_s11, %s557_s3 }
  0xf6   :  { %p469_p7 = pnand %p467_p6, %p464_p5 }
  0xf8   :  { %472 = shalt.err (!%p469_p7)
}
  0xf9   :  { %s476_s16 = smov 128   ;;  %s477_s17 = smov 8  }
  0xfa   :  { %371 = dma.vmem_to_hbm [thread:$0]  %s366_s2, 2048, %s557_s3, [#allocation4], %s476_s16, %s476_s16, %s477_s17  }
  0xfb   :  { %473 = dma.done.wait [#allocation4], 2048  }
  0xfc   :  { %474 = vsyncadd [#allocation4], 4294965248 }
  0xfd   :  { %375 = vsyncpa [#allocation4], 1 }

</bundles_post_ra>
